<compile_context>
chip_gen: v6e
topology: v6e:2x2x1
jax: 0.10.0
libtpu: 0.0.40
codegen_flags: <defaults>
</compile_context>

<pallas_src>
import jax
import jax.numpy as jnp
from jax.experimental import pallas as pl
from jax.experimental.pallas import tpu as pltpu

# Synthetic config (deterministic, in-script):
MAX_DISPLACEMENT = 128   # cfg.DISP.MAX_DISPLACEMENT
NUM_CLASSES = 4          # cfg.MODEL.NUM_CLASSES (only feeds the dead-code branch)


def _round_up(n, m):
    return ((n + m - 1) // m) * m


def _dispreg_kernel(x_ref, w_ref, o_ref):
    # x_ref: (TB, D) input tile (pipelined from HBM)
    # w_ref: (D, 1) disparity-weight column, VMEM-resident (constant index_map)
    # o_ref: (TB, 1) float32 output tile
    x = x_ref[...].astype(jnp.float32)
    # Weighted sum over the disparity axis as a skinny matmul on the MXU:
    # removes the per-tile VALU multiply + XLU lane-reduce entirely.
    o_ref[...] = jnp.dot(x, w_ref[...], preferred_element_type=jnp.float32)


def disparityregression_bat_forward(x, semseg=None, *, block_b=8192):
    """x: (B, D) float array (f32 or bf16). semseg: (B,) ints -- only used by
    dead code in the reference module, so it is accepted but ignored here."""
    # TODO(synk): the zeros/scans concatenation in the PyTorch source is dead
    # code (result unused) and its np.zeros call is malformed; not reproduced.
    B, D = x.shape

    # Batch tile: multiple of 8 (sublane), capped at block_b rows. No padding
    # of x; the grid is ragged and the last partial block's extra rows are
    # never written back.
    TB = max(8, (min(int(block_b), _round_up(B, 8)) // 8) * 8)
    grid = (pl.cdiv(B, TB),)

    # Disparity weights as a tiny VMEM-resident column (fetched once).
    w = jnp.arange(D, dtype=jnp.float32).reshape(D, 1)

    # Double-buffered x tiles + double-buffered (lane-padded) output tiles,
    # plus slack. Capped at 64 MiB (v7x physical VMEM per TensorCore).
    itemsize = jnp.dtype(x.dtype).itemsize
    vmem_bytes = 2 * TB * D * itemsize + 2 * TB * 128 * 4 + (2 << 20)
    vmem_limit = min(max(vmem_bytes, 32 * 1024 * 1024), 64 * 1024 * 1024)

    out = pl.pallas_call(
        _dispreg_kernel,
        out_shape=jax.ShapeDtypeStruct((B, 1), jnp.float32),
        grid=grid,
        in_specs=[
            pl.BlockSpec((TB, D), lambda i: (i, 0)),
            pl.BlockSpec((D, 1), lambda i: (0, 0)),   # resident weights
        ],
        out_specs=pl.BlockSpec((TB, 1), lambda i: (i, 0)),
        compiler_params=pltpu.CompilerParams(
            # Batch tiles are independent -> shard across TensorCores on v7x.
            dimension_semantics=("parallel",),
            vmem_limit_bytes=vmem_limit,
        ),
    )(x, w)
    return out[:, 0]                                   # (B,) float32


if __name__ == "__main__":
    key = jax.random.PRNGKey(0)
    k_x, k_s, k_x2, k_x3 = jax.random.split(key, 4)

    B, D = 8, MAX_DISPLACEMENT
    # x is a per-batch probability distribution over disparities (softmax-like).
    logits = jax.random.normal(k_x, (B, D), dtype=jnp.float32)
    x = jax.nn.softmax(logits, axis=1)
    # semseg: per-batch class ids (unused by the live compute path).
    semseg = jax.random.randint(k_s, (B,), 0, NUM_CLASSES)

    out = jax.block_until_ready(disparityregression_bat_forward(x, semseg))
    ref = jnp.sum(x * jnp.arange(D, dtype=jnp.float32)[None, :], axis=1)
    assert out.shape == (B,)
    assert jnp.allclose(out, ref, atol=1e-5, rtol=1e-5), (out, ref)

    # Ragged-boundary path: batch not a multiple of the sublane tile.
    B2 = 10
    x2 = jax.nn.softmax(jax.random.normal(k_x2, (B2, D), dtype=jnp.float32), axis=1)
    out2 = jax.block_until_ready(disparityregression_bat_forward(x2))
    ref2 = jnp.sum(x2 * jnp.arange(D, dtype=jnp.float32)[None, :], axis=1)
    assert out2.shape == (B2,)
    assert jnp.allclose(out2, ref2, atol=1e-5, rtol=1e-5), (out2, ref2)

    # bf16 input path: kernel accumulates in f32 and returns f32.
    B3 = 16
    x3 = jax.nn.softmax(
        jax.random.normal(k_x3, (B3, D), dtype=jnp.float32), axis=1
    ).astype(jnp.bfloat16)
    out3 = jax.block_until_ready(disparityregression_bat_forward(x3))
    ref3 = jnp.sum(
        x3.astype(jnp.float32) * jnp.arange(D, dtype=jnp.float32)[None, :], axis=1
    )
    assert out3.shape == (B3,) and out3.dtype == jnp.float32
    assert jnp.allclose(out3, ref3, atol=1e-3, rtol=1e-3), (out3, ref3)

    print("KERNEL_OK")
</pallas_src>

<mosaic_0001>
module attributes {stable_mosaic.version = 11 : i64} {
  func.func @_dispreg_kernel(%arg0: i32, %arg1: memref<8x128xf32, #tpu.memory_space<vmem>>, %arg2: memref<128x1xf32, #tpu.memory_space<vmem>>, %arg3: memref<8x1xf32, #tpu.memory_space<vmem>>) attributes {dimension_semantics = [#tpu.dimension_semantics<parallel>], iteration_bounds = array<i64: 1>, scalar_prefetch = 0 : i64, scratch_operands = 0 : i64, tpu.core_type = #tpu.core_type<tc>, window_params = [{transform_indices = @transform_0, window_bounds = array<i64: 8, 128>}, {pipeline_mode = #tpu.pipeline_mode<synchronous>, transform_indices = @transform_1, window_bounds = array<i64: 128, 1>}, {transform_indices = @transform_2, window_bounds = array<i64: 8, 1>}]} {
    %c0 = arith.constant 0 : index
    %c0_0 = arith.constant 0 : index
    %0 = vector.load %arg1[%c0, %c0_0] : memref<8x128xf32, #tpu.memory_space<vmem>>, vector<8x128xf32>
    %c0_1 = arith.constant 0 : index
    %c0_2 = arith.constant 0 : index
    %1 = vector.load %arg2[%c0_1, %c0_2] : memref<128x1xf32, #tpu.memory_space<vmem>>, vector<128x1xf32>
    %cst = arith.constant dense<0.000000e+00> : vector<8x1xf32>
    %2 = tpu.matmul %0, %1, %cst {dimension_numbers = #tpu.dot_dimension_numbers<[1], [0], [0], [1], [0, 0, 1, 1], [], []>} : vector<8x128xf32>, vector<128x1xf32>, vector<8x1xf32> -> vector<8x1xf32>
    %c0_3 = arith.constant 0 : index
    %c0_4 = arith.constant 0 : index
    %3 = vector.load %arg3[%c0_3, %c0_4] : memref<8x1xf32, #tpu.memory_space<vmem>>, vector<8x1xf32>
    tpu.vector_store %arg3[%c0_3, %c0_4], %2 {strides = array<i32>} : memref<8x1xf32, #tpu.memory_space<vmem>>, vector<8x1xf32>,
    return
  }
  func.func @transform_0(%arg0: i32) -> (i32, i32) {
    %c0_i32 = arith.constant 0 : i32
    %c0_i32_0 = arith.constant 0 : i32
    return %arg0, %c0_i32 : i32, i32
  }
  func.func @transform_1(%arg0: i32) -> (i32, i32) {
    %c0_i32 = arith.constant 0 : i32
    %c0_i32_0 = arith.constant 0 : i32
    %c0_i32_1 = arith.constant 0 : i32
    return %c0_i32, %c0_i32_0 : i32, i32
  }
  func.func @transform_2(%arg0: i32) -> (i32, i32) {
    %c0_i32 = arith.constant 0 : i32
    %c0_i32_0 = arith.constant 0 : i32
    return %arg0, %c0_i32 : i32, i32
  }
}

</mosaic_0001>

<bundles_post_ra>
// kernel: tpu_custom_call.1
= control target key start
LH: loop header
LB: loop body
LE: loop exit
PB: predicated region body
PF: predicated region fallthrough
CT: control target
= control target key end

     0   :  { %v158_v0 = vmov 0.0   ;;  %vm159_vm0 = vmmov 0   ;;  %vm98_vm1 = vcmask 7168   ;;  %s229_s1 = inlined_call_operand.vmem [shape: f32[128,1], index: 1, kind: input, shape index: {}]   ;;  %s230_s0 = inlined_call_operand.vmem [shape: f32[8,128], index: 0, kind: input, shape index: {}]   ;;  %s231_s2 = inlined_call_operand.vmem [shape: f32[8,1], index: 2, kind: output, shape index: {}]  }
   0x1   :  { %121 = vmatprep.subr.mxu0 %v158_v0  ;;  %v27_v1 = vld [vmem:[%s229_s1 + $0x78] sm:$0xff]  ;;  %v26_v2 = vld [vmem:[%s229_s1 + $0x70] sm:$0xff]  ;;  %153 = vmatprep.mubr.msk.f32.mxu0 %vm159_vm0, %v158_v0  ;;  %v25_v3 = vld [vmem:[%s229_s1 + $0x68] sm:$0xff] }
   0x2   :  { %122 = vmatpush3.msra.mxu0 %v27_v1  ;;  %v24_v4 = vld [vmem:[%s229_s1 + $0x60] sm:$0xff]  ;;  %v23_v5 = vld [vmem:[%s229_s1 + $0x58] sm:$0xff]  ;;  %v22_v6 = vld [vmem:[%s229_s1 + $0x50] sm:$0xff] }
   0x3   :  { %123 = vmatprep.subr.mxu0 %v158_v0  ;;  %v21_v7 = vld [vmem:[%s229_s1 + $0x48] sm:$0xff]  ;;  %v20_v8 = vld [vmem:[%s229_s1 + $0x40] sm:$0xff]  ;;  %v19_v9 = vld [vmem:[%s229_s1 + $0x38] sm:$0xff] }
   0x4   :  { %124 = vmatpush3.msra.mxu0 %v26_v2  ;;  %v18_v10 = vld [vmem:[%s229_s1 + $0x30] sm:$0xff]  ;;  %v17_v11 = vld [vmem:[%s229_s1 + $0x28] sm:$0xff]  ;;  %v16_v12 = vld [vmem:[%s229_s1 + $0x20] sm:$0xff] }
   0x5   :  { %125 = vmatprep.subr.mxu0 %v158_v0  ;;  %v15_v13 = vld [vmem:[%s229_s1 + $0x18] sm:$0xff]  ;;  %v14_v14 = vld [vmem:[%s229_s1 + $0x10] sm:$0xff]  ;;  %v13_v15 = vld [vmem:[%s229_s1 + $0x8] sm:$0xff] }
   0x6   :  { %126 = vmatpush3.msra.mxu0 %v25_v3  ;;  %v12_v16 = vld [vmem:[%s229_s1] sm:$0xff] }
   0x7   :  { %127 = vmatprep.subr.mxu0 %v158_v0  ;;  %v11_v17 = vld [vmem:[%s230_s0] sm:$0xff] }
   0x8   :  { %128 = vmatpush3.msra.mxu0 %v24_v4 }
   0x9   :  { %129 = vmatprep.subr.mxu0 %v158_v0 }
   0xa   :  { %130 = vmatpush3.msra.mxu0 %v23_v5 }
   0xb   :  { %131 = vmatprep.subr.mxu0 %v158_v0 }
   0xc   :  { %132 = vmatpush3.msra.mxu0 %v22_v6 }
   0xd   :  { %133 = vmatprep.subr.mxu0 %v158_v0 }
   0xe   :  { %134 = vmatpush3.msra.mxu0 %v21_v7 }
   0xf   :  { %135 = vmatprep.subr.mxu0 %v158_v0 }
  0x10   :  { %136 = vmatpush3.msra.mxu0 %v20_v8 }
  0x11   :  { %137 = vmatprep.subr.mxu0 %v158_v0 }
  0x12   :  { %138 = vmatpush3.msra.mxu0 %v19_v9 }
  0x13   :  { %139 = vmatprep.subr.mxu0 %v158_v0 }
  0x14   :  { %140 = vmatpush3.msra.mxu0 %v18_v10 }
  0x15   :  { %141 = vmatprep.subr.mxu0 %v158_v0 }
  0x16   :  { %142 = vmatpush3.msra.mxu0 %v17_v11 }
  0x17   :  { %143 = vmatprep.subr.mxu0 %v158_v0 }
  0x18   :  { %144 = vmatpush3.msra.mxu0 %v16_v12 }
  0x19   :  { %145 = vmatprep.subr.mxu0 %v158_v0 }
  0x1a   :  { %146 = vmatpush3.msra.mxu0 %v15_v13 }
  0x1b   :  { %147 = vmatprep.subr.mxu0 %v158_v0 }
  0x1c   :  { %148 = vmatpush3.msra.mxu0 %v14_v14 }
  0x1d   :  { %149 = vmatprep.subr.mxu0 %v158_v0 }
  0x1e   :  { %150 = vmatpush3.msra.mxu0 %v13_v15 }
  0x1f   :  { %151 = vmatprep.subr.mxu0 %v158_v0 }
  0x20   :  { %152 = vmatpush3.msra.mxu0 %v12_v16 }
  0x21   :  { %154 = vmatmul.mubr.f32.vlgmr.msra.gmra.mxu0 %v11_v17 }
  0xe1   :  { %v94_v18 = vpop.f32.mrf.mxu0 }
  0xe2   :  { %99 = vst.msk [vmem:[%s231_s2] sm:$0xff] %vm98_vm1, %v94_v18 }
  0xe3   :  { %v155_v19 = vpop.f32.mrf.mxu0 }

</bundles_post_ra>
